<compile_context>
chip_gen: v6e
topology: v6e:2x2x1
jax: 0.10.0
libtpu: 0.0.40
codegen_flags: <defaults>
</compile_context>

<pallas_src>
import jax
import jax.numpy as jnp
from jax.experimental import pallas as pl
from jax.experimental.pallas import tpu as pltpu


_SUB_ROWS = 1024  # rows per in-kernel chunk: bounds live f32 intermediates


def _fraud_classifier_kernel(m_ref, z_ref, w1m_ref, w1z_ref, b1_ref,
                             w2r_ref, b2_ref, o_ref):
    # m_ref: (tile, F)   z_ref: (tile, L)
    # w1m_ref: (F, H)    w1z_ref: (L, H)   b1_ref: (1, H)
    # w2r_ref: (1, H)    b2_ref: (1, 1)    o_ref: (tile, 1)
    w1m = w1m_ref[...]            # hoist tiny resident weights out of the loop
    w1z = w1z_ref[...]
    b1 = b1_ref[...]
    w2r = w2r_ref[...]
    b2 = b2_ref[...]

    rows = m_ref.shape[0]
    for r0 in range(0, rows, _SUB_ROWS):          # static, small trip count
        n = min(_SUB_ROWS, rows - r0)
        sl = pl.ds(r0, n)
        # cat([m, z], 1) @ W1  ==  m @ W1[:F] + z @ W1[F:]   (f32 MXU)
        h = jnp.dot(m_ref[sl, :], w1m, preferred_element_type=jnp.float32)
        h = h + jnp.dot(z_ref[sl, :], w1z, preferred_element_type=jnp.float32)
        h = jnp.maximum(h + b1, 0.0)              # bias + ReLU (f32 VPU)
        # Second layer (64 -> 1): VPU multiply + lane reduction (keeps the MXU
        # free and avoids popping a 1/128-dense matvec result).
        y = jnp.sum(h * w2r, axis=-1, keepdims=True) + b2
        # TODO(synk): lane-dense (tile//128, 128) output layout would need a
        # sublane->lane relayout of this (n, 1) column that Mosaic does not
        # reliably lower in-register; keeping the (tile, 1) store.
        o_ref[sl, :] = jax.nn.sigmoid(y).astype(o_ref.dtype)


def _pick_tile_m(batch, tile_m):
    """Batch-tile size: the whole (8-aligned) batch when it fits in one tile
    (no wasted grid steps on single-TC v5e/v6e), else fixed tile_m blocks
    (multi-step 'parallel' grid that v7x's two TensorCores can share)."""
    b_aligned = ((batch + 7) // 8) * 8        # sublane alignment
    if b_aligned <= tile_m:
        return max(b_aligned, 8)
    return max(((tile_m + 7) // 8) * 8, 8)


def fraud_classifier_forward(m, z, w1, b1, w2, b2, *, tile_m=4096):
    """m: (B, F) f32, z: (B, L) f32.
    w1: (F+L, 64), b1: (1, 64), w2: (64, 1), b2: (1, 1)  -- (in, out) layout.
    Returns sigmoid(relu(cat([m, z], 1) @ w1 + b1) @ w2 + b2): (B, 1)."""
    B, F = m.shape
    L = z.shape[1]
    H = w1.shape[1]
    assert w1.shape == (F + L, H) and w2.shape == (H, 1)

    tile = _pick_tile_m(B, tile_m)
    n_blocks = pl.cdiv(B, tile)

    # Fold the concat by splitting W1 once (tiny slices); W2 as a (1, H) row.
    w1m, w1z = w1[:F], w1[F:]
    w2row = w2.reshape(1, H)
    b1 = b1.reshape(1, H)
    b2 = b2.reshape(1, 1)

    cost = pl.CostEstimate(
        flops=int(2 * B * (F + L) * H + 2 * B * H),
        transcendentals=int(B),                              # sigmoid per row
        bytes_accessed=int(4 * (B * (F + L) + B + (F + L) * H + 2 * H + 1)),
    )

    return pl.pallas_call(
        _fraud_classifier_kernel,
        out_shape=jax.ShapeDtypeStruct((B, 1), m.dtype),
        grid_spec=pltpu.PrefetchScalarGridSpec(
            num_scalar_prefetch=0,
            grid=(n_blocks,),
            in_specs=[
                pl.BlockSpec((tile, F), lambda i: (i, 0)),   # m tile (ragged tail OK)
                pl.BlockSpec((tile, L), lambda i: (i, 0)),   # z tile
                pl.BlockSpec((F, H), lambda i: (0, 0)),      # W1[:F]  (resident)
                pl.BlockSpec((L, H), lambda i: (0, 0)),      # W1[F:]  (resident)
                pl.BlockSpec((1, H), lambda i: (0, 0)),      # b1
                pl.BlockSpec((1, H), lambda i: (0, 0)),      # W2 row
                pl.BlockSpec((1, 1), lambda i: (0, 0)),      # b2
            ],
            out_specs=pl.BlockSpec((tile, 1), lambda i: (i, 0)),
        ),
        compiler_params=pltpu.CompilerParams(
            dimension_semantics=("parallel",),
            vmem_limit_bytes=32 * 1024 * 1024,
        ),
        cost_estimate=cost,
    )(m, z, w1m, w1z, b1, w2row, b2)


def init_params(key, feature_dim, latent_dim, hidden_dim=64):
    """PyTorch-like uniform init; weights stored as (in, out)."""
    d_in = feature_dim + latent_dim
    k1, k2, k3, k4 = jax.random.split(key, 4)
    bound1 = float(d_in) ** -0.5
    bound2 = float(hidden_dim) ** -0.5
    w1 = jax.random.uniform(k1, (d_in, hidden_dim), jnp.float32, -bound1, bound1)
    b1 = jax.random.uniform(k2, (1, hidden_dim), jnp.float32, -bound1, bound1)
    w2 = jax.random.uniform(k3, (hidden_dim, 1), jnp.float32, -bound2, bound2)
    b2 = jax.random.uniform(k4, (1, 1), jnp.float32, -bound2, bound2)
    return w1, b1, w2, b2


if __name__ == "__main__":
    # Shapes consistent with FraudClassifier(feature_dim=32, latent_dim=16)
    FEATURE_DIM, LATENT_DIM, HIDDEN = 32, 16, 64
    B = 256

    key = jax.random.PRNGKey(0)
    km, kz, kp = jax.random.split(key, 3)
    m = jax.random.normal(km, (B, FEATURE_DIM), jnp.float32)
    z = jax.random.normal(kz, (B, LATENT_DIM), jnp.float32)
    w1, b1, w2, b2 = init_params(kp, FEATURE_DIM, LATENT_DIM, HIDDEN)

    def ref_forward(mm, zz):
        x = jnp.concatenate([mm, zz], axis=1)
        h = jnp.maximum(jnp.dot(x, w1, precision=jax.lax.Precision.HIGHEST) + b1, 0.0)
        return jax.nn.sigmoid(jnp.dot(h, w2, precision=jax.lax.Precision.HIGHEST) + b2)

    # Single-tile path (whole batch in one grid step).
    out = jax.block_until_ready(fraud_classifier_forward(m, z, w1, b1, w2, b2))
    ref = ref_forward(m, z)
    assert out.shape == (B, 1)
    assert jnp.allclose(out, ref, atol=2e-3, rtol=2e-3), \
        float(jnp.max(jnp.abs(out - ref)))

    # Ragged batch (not a multiple of 8/128) -- no jnp.pad anywhere.
    B2 = 37
    out2 = jax.block_until_ready(
        fraud_classifier_forward(m[:B2], z[:B2], w1, b1, w2, b2))
    assert out2.shape == (B2, 1)
    assert jnp.allclose(out2, ref_forward(m[:B2], z[:B2]), atol=2e-3, rtol=2e-3)

    # Multi-block grid with a ragged last block (small tile_m keeps it cheap).
    B3 = 200
    out3 = jax.block_until_ready(
        fraud_classifier_forward(m[:B3], z[:B3], w1, b1, w2, b2, tile_m=64))
    assert out3.shape == (B3, 1)
    assert jnp.allclose(out3, ref_forward(m[:B3], z[:B3]), atol=2e-3, rtol=2e-3)

    print("KERNEL_OK")
</pallas_src>

<mosaic_0001>
module attributes {stable_mosaic.version = 11 : i64} {
  func.func @_fraud_classifier_kernel(%arg0: i32, %arg1: memref<256x32xf32, #tpu.memory_space<vmem>>, %arg2: memref<256x16xf32, #tpu.memory_space<vmem>>, %arg3: memref<32x64xf32, #tpu.memory_space<vmem>>, %arg4: memref<16x64xf32, #tpu.memory_space<vmem>>, %arg5: memref<1x64xf32, #tpu.memory_space<vmem>>, %arg6: memref<1x64xf32, #tpu.memory_space<vmem>>, %arg7: memref<1x1xf32, #tpu.memory_space<vmem>>, %arg8: memref<256x1xf32, #tpu.memory_space<vmem>>) attributes {dimension_semantics = [#tpu.dimension_semantics<parallel>], iteration_bounds = array<i64: 1>, scalar_prefetch = 0 : i64, scratch_operands = 0 : i64, tpu.core_type = #tpu.core_type<tc>, window_params = [{transform_indices = @transform_0, window_bounds = array<i64: 256, 32>}, {transform_indices = @transform_1, window_bounds = array<i64: 256, 16>}, {pipeline_mode = #tpu.pipeline_mode<synchronous>, transform_indices = @transform_2, window_bounds = array<i64: 32, 64>}, {pipeline_mode = #tpu.pipeline_mode<synchronous>, transform_indices = @transform_3, window_bounds = array<i64: 16, 64>}, {pipeline_mode = #tpu.pipeline_mode<synchronous>, transform_indices = @transform_4, window_bounds = array<i64: 1, 64>}, {pipeline_mode = #tpu.pipeline_mode<synchronous>, transform_indices = @transform_5, window_bounds = array<i64: 1, 64>}, {pipeline_mode = #tpu.pipeline_mode<synchronous>, transform_indices = @transform_6, window_bounds = array<i64: 1, 1>}, {transform_indices = @transform_7, window_bounds = array<i64: 256, 1>}]} {
    %c0 = arith.constant 0 : index
    %c0_0 = arith.constant 0 : index
    %0 = vector.load %arg3[%c0, %c0_0] : memref<32x64xf32, #tpu.memory_space<vmem>>, vector<32x64xf32>
    %c0_1 = arith.constant 0 : index
    %c0_2 = arith.constant 0 : index
    %1 = vector.load %arg4[%c0_1, %c0_2] : memref<16x64xf32, #tpu.memory_space<vmem>>, vector<16x64xf32>
    %c0_3 = arith.constant 0 : index
    %c0_4 = arith.constant 0 : index
    %2 = vector.load %arg5[%c0_3, %c0_4] : memref<1x64xf32, #tpu.memory_space<vmem>>, vector<1x64xf32>
    %c0_5 = arith.constant 0 : index
    %c0_6 = arith.constant 0 : index
    %3 = vector.load %arg6[%c0_5, %c0_6] : memref<1x64xf32, #tpu.memory_space<vmem>>, vector<1x64xf32>
    %c0_7 = arith.constant 0 : index
    %c0_8 = arith.constant 0 : index
    %4 = vector.load %arg7[%c0_7, %c0_8] : memref<1x1xf32, #tpu.memory_space<vmem>>, vector<1x1xf32>
    %c0_9 = arith.constant 0 : index
    %c0_10 = arith.constant 0 : index
    %5 = vector.load %arg1[%c0_9, %c0_10] : memref<256x32xf32, #tpu.memory_space<vmem>>, vector<256x32xf32>
    %cst = arith.constant dense<0.000000e+00> : vector<256x64xf32>
    %6 = tpu.matmul %5, %0, %cst {dimension_numbers = #tpu.dot_dimension_numbers<[1], [0], [0], [1], [0, 0, 1, 1], [], []>} : vector<256x32xf32>, vector<32x64xf32>, vector<256x64xf32> -> vector<256x64xf32>
    %c0_11 = arith.constant 0 : index
    %c0_12 = arith.constant 0 : index
    %7 = vector.load %arg2[%c0_11, %c0_12] : memref<256x16xf32, #tpu.memory_space<vmem>>, vector<256x16xf32>
    %cst_13 = arith.constant dense<0.000000e+00> : vector<256x64xf32>
    %8 = tpu.matmul %7, %1, %cst_13 {dimension_numbers = #tpu.dot_dimension_numbers<[1], [0], [0], [1], [0, 0, 1, 1], [], []>} : vector<256x16xf32>, vector<16x64xf32>, vector<256x64xf32> -> vector<256x64xf32>
    %9 = arith.addf %6, %8 : vector<256x64xf32>
    %10 = vector.broadcast %2 : vector<1x64xf32> to vector<256x64xf32>
    %11 = arith.addf %9, %10 : vector<256x64xf32>
    %cst_14 = arith.constant 0.000000e+00 : f32
    %12 = vector.broadcast %cst_14 : f32 to vector<256x64xf32>
    %13 = arith.maximumf %11, %12 : vector<256x64xf32>
    %14 = vector.broadcast %3 : vector<1x64xf32> to vector<256x64xf32>
    %15 = arith.mulf %13, %14 : vector<256x64xf32>
    %cst_15 = arith.constant dense<0.000000e+00> : vector<256xf32>
    %16 = vector.multi_reduction <add>, %15, %cst_15 [1] : vector<256x64xf32> to vector<256xf32>
    %17 = vector.shape_cast %16 : vector<256xf32> to vector<256x1xf32>
    %18 = vector.broadcast %4 : vector<1x1xf32> to vector<256x1xf32>
    %19 = arith.addf %17, %18 : vector<256x1xf32>
    %20 = arith.negf %19 : vector<256x1xf32>
    %21 = math.exp %20 : vector<256x1xf32>
    %cst_16 = arith.constant 1.000000e+00 : f32
    %22 = vector.broadcast %cst_16 : f32 to vector<256x1xf32>
    %23 = arith.addf %22, %21 : vector<256x1xf32>
    %24 = arith.divf %22, %23 : vector<256x1xf32>
    %c0_17 = arith.constant 0 : index
    %c0_18 = arith.constant 0 : index
    %25 = vector.load %arg8[%c0_17, %c0_18] : memref<256x1xf32, #tpu.memory_space<vmem>>, vector<256x1xf32>
    tpu.vector_store %arg8[%c0_17, %c0_18], %24 {strides = array<i32>} : memref<256x1xf32, #tpu.memory_space<vmem>>, vector<256x1xf32>,
    return
  }
  func.func @transform_0(%arg0: i32) -> (i32, i32) {
    %c0_i32 = arith.constant 0 : i32
    %c0_i32_0 = arith.constant 0 : i32
    return %arg0, %c0_i32 : i32, i32
  }
  func.func @transform_1(%arg0: i32) -> (i32, i32) {
    %c0_i32 = arith.constant 0 : i32
    %c0_i32_0 = arith.constant 0 : i32
    return %arg0, %c0_i32 : i32, i32
  }
  func.func @transform_2(%arg0: i32) -> (i32, i32) {
    %c0_i32 = arith.constant 0 : i32
    %c0_i32_0 = arith.constant 0 : i32
    %c0_i32_1 = arith.constant 0 : i32
    return %c0_i32, %c0_i32_0 : i32, i32
  }
  func.func @transform_3(%arg0: i32) -> (i32, i32) {
    %c0_i32 = arith.constant 0 : i32
    %c0_i32_0 = arith.constant 0 : i32
    %c0_i32_1 = arith.constant 0 : i32
    return %c0_i32, %c0_i32_0 : i32, i32
  }
  func.func @transform_4(%arg0: i32) -> (i32, i32) {
    %c0_i32 = arith.constant 0 : i32
    %c0_i32_0 = arith.constant 0 : i32
    %c0_i32_1 = arith.constant 0 : i32
    return %c0_i32, %c0_i32_0 : i32, i32
  }
  func.func @transform_5(%arg0: i32) -> (i32, i32) {
    %c0_i32 = arith.constant 0 : i32
    %c0_i32_0 = arith.constant 0 : i32
    %c0_i32_1 = arith.constant 0 : i32
    return %c0_i32, %c0_i32_0 : i32, i32
  }
  func.func @transform_6(%arg0: i32) -> (i32, i32) {
    %c0_i32 = arith.constant 0 : i32
    %c0_i32_0 = arith.constant 0 : i32
    %c0_i32_1 = arith.constant 0 : i32
    return %c0_i32, %c0_i32_0 : i32, i32
  }
  func.func @transform_7(%arg0: i32) -> (i32, i32) {
    %c0_i32 = arith.constant 0 : i32
    %c0_i32_0 = arith.constant 0 : i32
    return %arg0, %c0_i32 : i32, i32
  }
}

</mosaic_0001>

<bundles_post_ra>
// kernel: tpu_custom_call.1
= control target key start
LH: loop header
LB: loop body
LE: loop exit
PB: predicated region body
PF: predicated region fallthrough
CT: control target
= control target key end

     0   :  { %vm101_vm0 = vcmask 130048   ;;  %vm423_vm1 = vcmask 261120   ;;  %vm853_vm2 = vcmask 523264   ;;  %vm1180_vm3 = vcmask 7168   ;;  %s2207_s2 = inlined_call_operand.vmem [shape: f32[32,64], index: 2, kind: input, shape index: {}]   ;;  %s2208_s3 = inlined_call_operand.vmem [shape: f32[16,64], index: 3, kind: input, shape index: {}]   ;;  %s2209_s1 = inlined_call_operand.vmem [shape: f32[256,16], index: 1, kind: input, shape index: {}]   ;;  %s2210_s0 = inlined_call_operand.vmem [shape: f32[256,32], index: 0, kind: input, shape index: {}]   ;;  %s2211_s6 = inlined_call_operand.<no memory space> [shape: f32[1,1], index: 6, kind: input, shape index: {}]   ;;  %s2212_s4 = inlined_call_operand.vmem [shape: f32[1,64], index: 4, kind: input, shape index: {}]   ;;  %s2213_s5 = inlined_call_operand.vmem [shape: f32[1,64], index: 5, kind: input, shape index: {}]   ;;  %s2214_s7 = inlined_call_operand.vmem [shape: f32[256,1], index: 7, kind: output, shape index: {}]  }
   0x1   :  { %v31_v0 = vld [vmem:[%s2207_s2 + $0x18] sm:$0xff]  ;;  %v33_v1 = vld [vmem:[%s2208_s3 + $0x8] sm:$0xff]  ;;  %v30_v2 = vld [vmem:[%s2207_s2 + $0x10] sm:$0xff] }
   0x2   :  { %1438 = vmatprep.subr.mxu1 %v31_v0  ;;  %1386 = vmatprep.subr.mxu0 %v33_v1  ;;  %v32_v3 = vld [vmem:[%s2208_s3] sm:$0xff]  ;;  %v29_v4 = vld [vmem:[%s2207_s2 + $0x8] sm:$0xff]  ;;  %v71_v9 = vld [vmem:[%s2209_s1 + $0x10] sm:$0xff] }
   0x3   :  { %1439 = vmatpush3.msra.mxu1 %v31_v0  ;;  %1387 = vmatpush3.msra.mxu0 %v33_v1  ;;  %v69_v5 = vld [vmem:[%s2209_s1] sm:$0xff]  ;;  %v70_v6 = vld [vmem:[%s2209_s1 + $0x8] sm:$0xff]  ;;  %v72_v11 = vld [vmem:[%s2209_s1 + $0x18] sm:$0xff] }
   0x4   :  { %1440 = vmatprep.subr.mxu1 %v30_v2  ;;  %1388 = vmatprep.subr.mxu0 %v32_v3  ;;  %v28_v7 = vld [vmem:[%s2207_s2] sm:$0xff]  ;;  %v38_v10 = vld [vmem:[%s2210_s0 + $0x8] sm:$0xff]  ;;  %v39_v12 = vld [vmem:[%s2210_s0 + $0x10] sm:$0xff] }
   0x5   :  { %1441 = vmatpush3.msra.mxu1 %v30_v2  ;;  %1389 = vmatpush3.msra.mxu0 %v32_v3  ;;  %v37_v8 = vld [vmem:[%s2210_s0] sm:$0xff]  ;;  %v40_v14 = vld [vmem:[%s2210_s0 + $0x18] sm:$0xff]  ;;  %v74_v16 = vld [vmem:[%s2209_s1 + $0x28] sm:$0xff] }
   0x6   :  { %1442 = vmatprep.subr.mxu1 %v29_v4  ;;  %1390 = vmatprep.mubr.msk.f32.mxu0 %vm101_vm0, %v69_v5  ;;  %v73_v13 = vld [vmem:[%s2209_s1 + $0x20] sm:$0xff]  ;;  %v75_v17 = vld [vmem:[%s2209_s1 + $0x30] sm:$0xff]  ;;  %v42_v18 = vld [vmem:[%s2210_s0 + $0x28] sm:$0xff] }
   0x7   :  { %1443 = vmatpush3.msra.mxu1 %v29_v4  ;;  %1391 = vmatmul.mubr.msk.f32.vlgmr.msra.gmra.mxu0 %vm101_vm0, %v70_v6  ;;  %v41_v15 = vld [vmem:[%s2210_s0 + $0x20] sm:$0xff]  ;;  %v43_v19 = vld [vmem:[%s2210_s0 + $0x30] sm:$0xff]  ;;  %v76_v20 = vld [vmem:[%s2209_s1 + $0x38] sm:$0xff]  ;;  %v12_v6 = vstv %s2211_s6 }
   0x8   :  { %1444 = vmatprep.subr.mxu1 %v28_v7  ;;  %1446 = vmatprep.mubr.msk.f32.mxu1 %vm423_vm1, %v37_v8  ;;  %v77_v21 = vld [vmem:[%s2209_s1 + $0x40] sm:$0xff]  ;;  %v44_v22 = vld [vmem:[%s2210_s0 + $0x38] sm:$0xff]  ;;  %v78_v24 = vld [vmem:[%s2209_s1 + $0x48] sm:$0xff]  ;;  %13 = vst [vmem:[#allocation2] sm:$0x1] %v12_v6 }
   0x9   :  { %1445 = vmatpush3.msra.mxu1 %v28_v7  ;;  %1393 = vmatprep.mubr.msk.f32.mxu0 %vm101_vm0, %v71_v9  ;;  %v45_v23 = vld [vmem:[%s2210_s0 + $0x40] sm:$0xff]  ;;  %v79_v25 = vld [vmem:[%s2209_s1 + $0x50] sm:$0xff]  ;;  %v46_v26 = vld [vmem:[%s2210_s0 + $0x48] sm:$0xff] }
   0xa   :  { %1447 = vmatmul.mubr.msk.f32.vlgmr.msra.gmra.mxu1 %vm423_vm1, %v38_v10  ;;  %v47_v27 = vld [vmem:[%s2210_s0 + $0x50] sm:$0xff]  ;;  %v80_v28 = vld [vmem:[%s2209_s1 + $0x58] sm:$0xff]  ;;  %v81_v29 = vld [vmem:[%s2209_s1 + $0x60] sm:$0xff] }
   0xb   :  { %1394 = vmatmul.mubr.msk.f32.gmra.mxu0 %vm101_vm0, %v72_v11  ;;  %1449 = vmatprep.mubr.msk.f32.mxu1 %vm423_vm1, %v39_v12  ;;  %v48_v30 = vld [vmem:[%s2210_s0 + $0x58] sm:$0xff]  ;;  %v49_v31 = vld [vmem:[%s2210_s0 + $0x60] sm:$0xff]  ;;  %v82_v32 = vld [vmem:[%s2209_s1 + $0x68] sm:$0xff] }
   0xc   :  { %1396 = vmatprep.mubr.msk.f32.mxu0 %vm101_vm0, %v73_v13  ;;  %v83_v33 = vld [vmem:[%s2209_s1 + $0x70] sm:$0xff]  ;;  %v50_v34 = vld [vmem:[%s2210_s0 + $0x68] sm:$0xff]  ;;  %v84_v36 = vld [vmem:[%s2209_s1 + $0x78] sm:$0xff] }
   0xd   :  { %v51_v35 = vld [vmem:[%s2210_s0 + $0x70] sm:$0xff]  ;;  %v85_v37 = vld [vmem:[%s2209_s1 + $0x80] sm:$0xff]  ;;  %v52_v38 = vld [vmem:[%s2210_s0 + $0x78] sm:$0xff] }
   0xe   :  { %1450 = vmatmul.mubr.msk.f32.gmra.mxu1 %vm423_vm1, %v40_v14  ;;  %v53_v39 = vld [vmem:[%s2210_s0 + $0x80] sm:$0xff]  ;;  %v86_v40 = vld [vmem:[%s2209_s1 + $0x88] sm:$0xff]  ;;  %v87_v41 = vld [vmem:[%s2209_s1 + $0x90] sm:$0xff] }
   0xf   :  { %1452 = vmatprep.mubr.msk.f32.mxu1 %vm423_vm1, %v41_v15  ;;  %1397 = vmatmul.mubr.msk.f32.gmra.mxu0 %vm101_vm0, %v74_v16  ;;  %v54_v42 = vld [vmem:[%s2210_s0 + $0x88] sm:$0xff]  ;;  %v55_v43 = vld [vmem:[%s2210_s0 + $0x90] sm:$0xff]  ;;  %v88_v44 = vld [vmem:[%s2209_s1 + $0x98] sm:$0xff] }
  0x10   :  { %1399 = vmatprep.mubr.msk.f32.mxu0 %vm101_vm0, %v75_v17  ;;  %v89_v45 = vld [vmem:[%s2209_s1 + $0xa0] sm:$0xff]  ;;  %v56_v46 = vld [vmem:[%s2210_s0 + $0x98] sm:$0xff]  ;;  %v90_v48 = vld [vmem:[%s2209_s1 + $0xa8] sm:$0xff] }
  0x11   :  { %v57_v47 = vld [vmem:[%s2210_s0 + $0xa0] sm:$0xff]  ;;  %v91_v49 = vld [vmem:[%s2209_s1 + $0xb0] sm:$0xff]  ;;  %v58_v50 = vld [vmem:[%s2210_s0 + $0xa8] sm:$0xff] }
  0x12   :  { %1453 = vmatmul.mubr.msk.f32.gmra.mxu1 %vm423_vm1, %v42_v18  ;;  %v59_v51 = vld [vmem:[%s2210_s0 + $0xb0] sm:$0xff]  ;;  %v92_v52 = vld [vmem:[%s2209_s1 + $0xb8] sm:$0xff]  ;;  %v93_v53 = vld [vmem:[%s2209_s1 + $0xc0] sm:$0xff] }
  0x13   :  { %1455 = vmatprep.mubr.msk.f32.mxu1 %vm423_vm1, %v43_v19  ;;  %1400 = vmatmul.mubr.msk.f32.gmra.mxu0 %vm101_vm0, %v76_v20  ;;  %v60_v54 = vld [vmem:[%s2210_s0 + $0xb8] sm:$0xff]  ;;  %v61_v55 = vld [vmem:[%s2210_s0 + $0xc0] sm:$0xff]  ;;  %v94_v56 = vld [vmem:[%s2209_s1 + $0xc8] sm:$0xff] }
  0x14   :  { %1402 = vmatprep.mubr.msk.f32.mxu0 %vm101_vm0, %v77_v21  ;;  %v95_v57 = vld [vmem:[%s2209_s1 + $0xd0] sm:$0xff]  ;;  %v62_v58 = vld [vmem:[%s2210_s0 + $0xc8] sm:$0xff]  ;;  %v96_v60 = vld [vmem:[%s2209_s1 + $0xd8] sm:$0xff] }
  0x15   :  { %v63_v59 = vld [vmem:[%s2210_s0 + $0xd0] sm:$0xff]  ;;  %v97_v61 = vld [vmem:[%s2209_s1 + $0xe0] sm:$0xff]  ;;  %v64_v62 = vld [vmem:[%s2210_s0 + $0xd8] sm:$0xff] }
  0x16   :  { %1456 = vmatmul.mubr.msk.f32.gmra.mxu1 %vm423_vm1, %v44_v22  ;;  %v65_v63 = vld [vmem:[%s2210_s0 + $0xe0] sm:$0xff]  ;;  %v98_v0 = vld [vmem:[%s2209_s1 + $0xe8] sm:$0xff]  ;;  %v99_v1 = vld [vmem:[%s2209_s1 + $0xf0] sm:$0xff] }
  0x17   :  { %1458 = vmatprep.mubr.msk.f32.mxu1 %vm423_vm1, %v45_v23  ;;  %1403 = vmatmul.mubr.msk.f32.gmra.mxu0 %vm101_vm0, %v78_v24  ;;  %v66_v2 = vld [vmem:[%s2210_s0 + $0xe8] sm:$0xff]  ;;  %v67_v3 = vld [vmem:[%s2210_s0 + $0xf0] sm:$0xff]  ;;  %v100_v4 = vld [vmem:[%s2209_s1 + $0xf8] sm:$0xff] }
  0x18   :  { %1405 = vmatprep.mubr.msk.f32.mxu0 %vm101_vm0, %v79_v25  ;;  %v68_v5 = vld [vmem:[%s2210_s0 + $0xf8] sm:$0xff]  ;;  %v1942_v9 = vld [vmem:[%s2212_s4] ss:$0 sm:$0xff] }
  0x19   :  { %v1948_v18 = vld [vmem:[%s2213_s5] ss:$0 sm:$0xff] }
  0x1a   :  { %1459 = vmatmul.mubr.msk.f32.gmra.mxu1 %vm423_vm1, %v46_v26 }
  0x1b   :  { %1461 = vmatprep.mubr.msk.f32.mxu1 %vm423_vm1, %v47_v27  ;;  %1406 = vmatmul.mubr.msk.f32.gmra.mxu0 %vm101_vm0, %v80_v28 }
  0x1c   :  { %1408 = vmatprep.mubr.msk.f32.mxu0 %vm101_vm0, %v81_v29 }
  0x1e   :  { %1462 = vmatmul.mubr.msk.f32.gmra.mxu1 %vm423_vm1, %v48_v30 }
  0x1f   :  { %1464 = vmatprep.mubr.msk.f32.mxu1 %vm423_vm1, %v49_v31  ;;  %1409 = vmatmul.mubr.msk.f32.gmra.mxu0 %vm101_vm0, %v82_v32 }
  0x20   :  { %1411 = vmatprep.mubr.msk.f32.mxu0 %vm101_vm0, %v83_v33 }
  0x22   :  { %1465 = vmatmul.mubr.msk.f32.gmra.mxu1 %vm423_vm1, %v50_v34 }
  0x23   :  { %1467 = vmatprep.mubr.msk.f32.mxu1 %vm423_vm1, %v51_v35  ;;  %1412 = vmatmul.mubr.msk.f32.gmra.mxu0 %vm101_vm0, %v84_v36 }
  0x24   :  { %1414 = vmatprep.mubr.msk.f32.mxu0 %vm101_vm0, %v85_v37 }
  0x26   :  { %1468 = vmatmul.mubr.msk.f32.gmra.mxu1 %vm423_vm1, %v52_v38 }
  0x27   :  { %1470 = vmatprep.mubr.msk.f32.mxu1 %vm423_vm1, %v53_v39  ;;  %1415 = vmatmul.mubr.msk.f32.gmra.mxu0 %vm101_vm0, %v86_v40 }
  0x28   :  { %1417 = vmatprep.mubr.msk.f32.mxu0 %vm101_vm0, %v87_v41 }
  0x2a   :  { %1471 = vmatmul.mubr.msk.f32.gmra.mxu1 %vm423_vm1, %v54_v42 }
  0x2b   :  { %1473 = vmatprep.mubr.msk.f32.mxu1 %vm423_vm1, %v55_v43  ;;  %1418 = vmatmul.mubr.msk.f32.gmra.mxu0 %vm101_vm0, %v88_v44 }
  0x2c   :  { %1420 = vmatprep.mubr.msk.f32.mxu0 %vm101_vm0, %v89_v45 }
  0x2e   :  { %1474 = vmatmul.mubr.msk.f32.gmra.mxu1 %vm423_vm1, %v56_v46 }
  0x2f   :  { %1476 = vmatprep.mubr.msk.f32.mxu1 %vm423_vm1, %v57_v47  ;;  %1421 = vmatmul.mubr.msk.f32.gmra.mxu0 %vm101_vm0, %v90_v48 }
  0x30   :  { %1423 = vmatprep.mubr.msk.f32.mxu0 %vm101_vm0, %v91_v49 }
  0x32   :  { %1477 = vmatmul.mubr.msk.f32.gmra.mxu1 %vm423_vm1, %v58_v50 }
  0x33   :  { %1479 = vmatprep.mubr.msk.f32.mxu1 %vm423_vm1, %v59_v51  ;;  %1424 = vmatmul.mubr.msk.f32.gmra.mxu0 %vm101_vm0, %v92_v52 }
  0x34   :  { %1426 = vmatprep.mubr.msk.f32.mxu0 %vm101_vm0, %v93_v53 }
  0x36   :  { %1480 = vmatmul.mubr.msk.f32.gmra.mxu1 %vm423_vm1, %v60_v54 }
  0x37   :  { %1482 = vmatprep.mubr.msk.f32.mxu1 %vm423_vm1, %v61_v55  ;;  %1427 = vmatmul.mubr.msk.f32.gmra.mxu0 %vm101_vm0, %v94_v56 }
  0x38   :  { %1429 = vmatprep.mubr.msk.f32.mxu0 %vm101_vm0, %v95_v57 }
  0x3a   :  { %1483 = vmatmul.mubr.msk.f32.gmra.mxu1 %vm423_vm1, %v62_v58 }
  0x3b   :  { %1485 = vmatprep.mubr.msk.f32.mxu1 %vm423_vm1, %v63_v59  ;;  %1430 = vmatmul.mubr.msk.f32.gmra.mxu0 %vm101_vm0, %v96_v60 }
  0x3c   :  { %1432 = vmatprep.mubr.msk.f32.mxu0 %vm101_vm0, %v97_v61 }
  0x3e   :  { %1486 = vmatmul.mubr.msk.f32.gmra.mxu1 %vm423_vm1, %v64_v62 }
  0x3f   :  { %1488 = vmatprep.mubr.msk.f32.mxu1 %vm423_vm1, %v65_v63  ;;  %1433 = vmatmul.mubr.msk.f32.gmra.mxu0 %vm101_vm0, %v98_v0 }
  0x40   :  { %1435 = vmatprep.mubr.msk.f32.mxu0 %vm101_vm0, %v99_v1 }
  0x42   :  { %1489 = vmatmul.mubr.msk.f32.gmra.mxu1 %vm423_vm1, %v66_v2 }
  0x43   :  { %1491 = vmatprep.mubr.msk.f32.mxu1 %vm423_vm1, %v67_v3  ;;  %1436 = vmatmul.mubr.msk.f32.gmra.mxu0 %vm101_vm0, %v100_v4 }
  0x46   :  { %1492 = vmatmul.mubr.msk.f32.gmra.mxu1 %vm423_vm1, %v68_v5 }
  0xc7   :  { %v1392_v7 = vpop.f32.mrf.mxu0 }
  0xc9   :  { %v264_v8 = vpop.f32.mrf.mxu0 }
  0xca   :  { %v1448_v10 = vpop.f32.mrf.mxu1 }
  0xcb   :  { %v592_v11 = vadd.f32 %v1448_v10, %v1392_v7  ;;  %v1395_v12 = vpop.f32.mrf.mxu0 }
  0xcc   :  { %v586_v13 = vpop.f32.mrf.mxu1 }
  0xcd   :  { %v752_v14 = vadd.f32 %v1942_v9, %v592_v11  ;;  %v587_v15 = vadd.f32 %v586_v13, %v264_v8  ;;  %v274_v16 = vpop.f32.mrf.mxu0 }
  0xce   :  { %v1451_v17 = vpop.f32.mrf.mxu1 }
  0xcf   :  { %v784_v19 = vmax.f32 %v752_v14, 0.0  ;;  %v751_v20 = vadd.f32 %v1942_v9, %v587_v15  ;;  %v602_v21 = vadd.f32 %v1451_v17, %v1395_v12  ;;  %v1398_v22 = vpop.f32.mrf.mxu0 }
  0xd0   :  { %v596_v23 = vpop.f32.mrf.mxu1 }
  0xd1   :  { %v783_v24 = vmax.f32 %v751_v20, 0.0  ;;  %v754_v25 = vadd.f32 %v1942_v9, %v602_v21  ;;  %v597_v26 = vadd.f32 %v596_v23, %v274_v16  ;;  %v284_v27 = vpop.f32.mrf.mxu0  ;;  %v822_v28 = vmul.f32 %v1948_v18, %v784_v19 }
  0xd2   :  { %v1454_v29 = vpop.f32.mrf.mxu1 }
  0xd3   :  { %v786_v30 = vmax.f32 %v754_v25, 0.0  ;;  %v753_v31 = vadd.f32 %v1942_v9, %v597_v26  ;;  %v612_v32 = vadd.f32 %v1454_v29, %v1398_v22  ;;  %v857_v33 = vsel %vm853_vm2, %v822_v28, 0.0  ;;  %v1401_v34 = vpop.f32.mrf.mxu0 }
  0xd4   :  { %858 = vadd.xlane.f32.xlu0 %v857_v33  ;;  %v606_v35 = vpop.f32.mrf.mxu1  ;;  %v821_v36 = vmul.f32 %v1948_v18, %v783_v24 }
  0xd5   :  { %v785_v37 = vmax.f32 %v753_v31, 0.0  ;;  %v756_v38 = vadd.f32 %v1942_v9, %v612_v32  ;;  %v607_v39 = vadd.f32 %v606_v35, %v284_v27  ;;  %v294_v40 = vpop.f32.mrf.mxu0  ;;  %v824_v41 = vmul.f32 %v1948_v18, %v786_v30 }
  0xd6   :  { %v1457_v42 = vpop.f32.mrf.mxu1  ;;  %v854_v43 = vsel %vm853_vm2, %v821_v36, 0.0 }
  0xd7   :  { %v788_v44 = vmax.f32 %v756_v38, 0.0  ;;  %v755_v45 = vadd.f32 %v1942_v9, %v607_v39  ;;  %v622_v46 = vadd.f32 %v1457_v42, %v1401_v34  ;;  %v863_v47 = vsel %vm853_vm2, %v824_v41, 0.0  ;;  %v1404_v48 = vpop.f32.mrf.mxu0 }
  0xd8   :  { %864 = vadd.xlane.f32.xlu1 %v863_v47  ;;  %v616_v49 = vpop.f32.mrf.mxu1  ;;  %855 = vadd.xlane.f32.xlu0 %v854_v43  ;;  %v823_v50 = vmul.f32 %v1948_v18, %v785_v37 }
  0xd9   :  { %v787_v51 = vmax.f32 %v755_v45, 0.0  ;;  %v758_v52 = vadd.f32 %v1942_v9, %v622_v46  ;;  %v617_v53 = vadd.f32 %v616_v49, %v294_v40  ;;  %v304_v54 = vpop.f32.mrf.mxu0  ;;  %v826_v57 = vmul.f32 %v1948_v18, %v788_v44 }
  0xda   :  { %v1460_v55 = vpop.f32.mrf.mxu1  ;;  %v860_v56 = vsel %vm853_vm2, %v823_v50, 0.0 }
  0xdb   :  { %v790_v58 = vmax.f32 %v758_v52, 0.0  ;;  %v757_v59 = vadd.f32 %v1942_v9, %v617_v53  ;;  %v632_v60 = vadd.f32 %v1460_v55, %v1404_v48  ;;  %v1407_v61 = vpop.f32.mrf.mxu0  ;;  %v825_v62 = vmul.f32 %v1948_v18, %v787_v51 }
  0xdc   :  { %v626_v63 = vpop.f32.mrf.mxu1  ;;  %861 = vadd.xlane.f32.xlu1 %v860_v56  ;;  %v869_v6 = vsel %vm853_vm2, %v826_v57, 0.0 }
  0xdd   :  { %v789_v0 = vmax.f32 %v757_v59, 0.0  ;;  %v760_v1 = vadd.f32 %v1942_v9, %v632_v60  ;;  %v627_v2 = vadd.f32 %v626_v63, %v304_v54  ;;  %v866_v3 = vsel %vm853_vm2, %v825_v62, 0.0  ;;  %v314_v4 = vpop.f32.mrf.mxu0 }
  0xde   :  { %v1463_v5 = vpop.f32.mrf.mxu1  ;;  %867 = vadd.xlane.f32.xlu0 %v866_v3  ;;  %v828_v7 = vmul.f32 %v1948_v18, %v790_v58 }
  0xdf   :  { %v792_v8 = vmax.f32 %v760_v1, 0.0  ;;  %v759_v10 = vadd.f32 %v1942_v9, %v627_v2  ;;  %v642_v11 = vadd.f32 %v1463_v5, %v1407_v61  ;;  %v1410_v12 = vpop.f32.mrf.mxu0  ;;  %v827_v13 = vmul.f32 %v1948_v18, %v789_v0 }
  0xe0   :  { %v636_v14 = vpop.f32.mrf.mxu1  ;;  %870 = vadd.xlane.f32.xlu1 %v869_v6  ;;  %v875_v22 = vsel %vm853_vm2, %v828_v7, 0.0 }
  0xe1   :  { %v791_v15 = vmax.f32 %v759_v10, 0.0  ;;  %v762_v16 = vadd.f32 %v1942_v9, %v642_v11  ;;  %v637_v17 = vadd.f32 %v636_v14, %v314_v4  ;;  %v872_v19 = vsel %vm853_vm2, %v827_v13, 0.0  ;;  %v324_v20 = vpop.f32.mrf.mxu0 }
  0xe2   :  { %v1466_v21 = vpop.f32.mrf.mxu1  ;;  %873 = vadd.xlane.f32.xlu0 %v872_v19  ;;  %v830_v23 = vmul.f32 %v1948_v18, %v792_v8 }
  0xe3   :  { %v794_v24 = vmax.f32 %v762_v16, 0.0  ;;  %v761_v25 = vadd.f32 %v1942_v9, %v637_v17  ;;  %v652_v26 = vadd.f32 %v1466_v21, %v1410_v12  ;;  %v1413_v27 = vpop.f32.mrf.mxu0  ;;  %v829_v28 = vmul.f32 %v1948_v18, %v791_v15 }
  0xe4   :  { %v646_v29 = vpop.f32.mrf.mxu1  ;;  %876 = vadd.xlane.f32.xlu1 %v875_v22  ;;  %v881_v36 = vsel %vm853_vm2, %v830_v23, 0.0 }
  0xe5   :  { %v793_v30 = vmax.f32 %v761_v25, 0.0  ;;  %v764_v31 = vadd.f32 %v1942_v9, %v652_v26  ;;  %v647_v32 = vadd.f32 %v646_v29, %v324_v20  ;;  %v878_v33 = vsel %vm853_vm2, %v829_v28, 0.0  ;;  %v334_v34 = vpop.f32.mrf.mxu0 }
  0xe6   :  { %v1469_v35 = vpop.f32.mrf.mxu1  ;;  %879 = vadd.xlane.f32.xlu0 %v878_v33  ;;  %v832_v37 = vmul.f32 %v1948_v18, %v794_v24 }
  0xe7   :  { %v796_v38 = vmax.f32 %v764_v31, 0.0  ;;  %v763_v39 = vadd.f32 %v1942_v9, %v647_v32  ;;  %v662_v40 = vadd.f32 %v1469_v35, %v1413_v27  ;;  %v1416_v41 = vpop.f32.mrf.mxu0  ;;  %v831_v42 = vmul.f32 %v1948_v18, %v793_v30 }
  0xe8   :  { %v656_v43 = vpop.f32.mrf.mxu1  ;;  %882 = vadd.xlane.f32.xlu1 %v881_v36  ;;  %v887_v50 = vsel %vm853_vm2, %v832_v37, 0.0 }
  0xe9   :  { %v795_v44 = vmax.f32 %v763_v39, 0.0  ;;  %v766_v45 = vadd.f32 %v1942_v9, %v662_v40  ;;  %v657_v46 = vadd.f32 %v656_v43, %v334_v34  ;;  %v884_v47 = vsel %vm853_vm2, %v831_v42, 0.0  ;;  %v344_v48 = vpop.f32.mrf.mxu0 }
  0xea   :  { %v1472_v49 = vpop.f32.mrf.mxu1  ;;  %885 = vadd.xlane.f32.xlu0 %v884_v47  ;;  %v834_v51 = vmul.f32 %v1948_v18, %v796_v38 }
  0xeb   :  { %v798_v52 = vmax.f32 %v766_v45, 0.0  ;;  %v765_v53 = vadd.f32 %v1942_v9, %v657_v46  ;;  %v672_v54 = vadd.f32 %v1472_v49, %v1416_v41  ;;  %v1419_v55 = vpop.f32.mrf.mxu0  ;;  %v833_v56 = vmul.f32 %v1948_v18, %v795_v44 }
  0xec   :  { %v666_v57 = vpop.f32.mrf.mxu1  ;;  %888 = vadd.xlane.f32.xlu1 %v887_v50  ;;  %v893_v0 = vsel %vm853_vm2, %v834_v51, 0.0 }
  0xed   :  { %v797_v58 = vmax.f32 %v765_v53, 0.0  ;;  %v768_v59 = vadd.f32 %v1942_v9, %v672_v54  ;;  %v667_v60 = vadd.f32 %v666_v57, %v344_v48  ;;  %v890_v61 = vsel %vm853_vm2, %v833_v56, 0.0  ;;  %v354_v62 = vpop.f32.mrf.mxu0 }
  0xee   :  { %v1475_v63 = vpop.f32.mrf.mxu1  ;;  %891 = vadd.xlane.f32.xlu0 %v890_v61  ;;  %v836_v1 = vmul.f32 %v1948_v18, %v798_v52 }
  0xef   :  { %v800_v2 = vmax.f32 %v768_v59, 0.0  ;;  %v767_v3 = vadd.f32 %v1942_v9, %v667_v60  ;;  %v682_v4 = vadd.f32 %v1475_v63, %v1419_v55  ;;  %v1422_v5 = vpop.f32.mrf.mxu0  ;;  %v835_v6 = vmul.f32 %v1948_v18, %v797_v58 }
  0xf0   :  { %v676_v7 = vpop.f32.mrf.mxu1  ;;  %894 = vadd.xlane.f32.xlu1 %v893_v0  ;;  %v899_v15 = vsel %vm853_vm2, %v836_v1, 0.0 }
  0xf1   :  { %v799_v8 = vmax.f32 %v767_v3, 0.0  ;;  %v770_v10 = vadd.f32 %v1942_v9, %v682_v4  ;;  %v677_v11 = vadd.f32 %v676_v7, %v354_v62  ;;  %v896_v12 = vsel %vm853_vm2, %v835_v6, 0.0  ;;  %v364_v13 = vpop.f32.mrf.mxu0 }
  0xf2   :  { %v1478_v14 = vpop.f32.mrf.mxu1  ;;  %897 = vadd.xlane.f32.xlu0 %v896_v12  ;;  %v838_v16 = vmul.f32 %v1948_v18, %v800_v2 }
  0xf3   :  { %v802_v17 = vmax.f32 %v770_v10, 0.0  ;;  %v769_v19 = vadd.f32 %v1942_v9, %v677_v11  ;;  %v692_v20 = vadd.f32 %v1478_v14, %v1422_v5  ;;  %v1425_v21 = vpop.f32.mrf.mxu0  ;;  %v837_v22 = vmul.f32 %v1948_v18, %v799_v8 }
  0xf4   :  { %v686_v23 = vpop.f32.mrf.mxu1  ;;  %900 = vadd.xlane.f32.xlu1 %v899_v15  ;;  %v905_v30 = vsel %vm853_vm2, %v838_v16, 0.0 }
  0xf5   :  { %v801_v24 = vmax.f32 %v769_v19, 0.0  ;;  %v772_v25 = vadd.f32 %v1942_v9, %v692_v20  ;;  %v687_v26 = vadd.f32 %v686_v23, %v364_v13  ;;  %v902_v27 = vsel %vm853_vm2, %v837_v22, 0.0  ;;  %v374_v28 = vpop.f32.mrf.mxu0 }
  0xf6   :  { %v1481_v29 = vpop.f32.mrf.mxu1  ;;  %903 = vadd.xlane.f32.xlu0 %v902_v27  ;;  %v840_v31 = vmul.f32 %v1948_v18, %v802_v17 }
  0xf7   :  { %v804_v32 = vmax.f32 %v772_v25, 0.0  ;;  %v771_v33 = vadd.f32 %v1942_v9, %v687_v26  ;;  %v702_v34 = vadd.f32 %v1481_v29, %v1425_v21  ;;  %v1428_v35 = vpop.f32.mrf.mxu0  ;;  %v839_v36 = vmul.f32 %v1948_v18, %v801_v24 }
  0xf8   :  { %v696_v37 = vpop.f32.mrf.mxu1  ;;  %906 = vadd.xlane.f32.xlu1 %v905_v30  ;;  %v911_v44 = vsel %vm853_vm2, %v840_v31, 0.0 }
  0xf9   :  { %v803_v38 = vmax.f32 %v771_v33, 0.0  ;;  %v774_v39 = vadd.f32 %v1942_v9, %v702_v34  ;;  %v697_v40 = vadd.f32 %v696_v37, %v374_v28  ;;  %v908_v41 = vsel %vm853_vm2, %v839_v36, 0.0  ;;  %v384_v42 = vpop.f32.mrf.mxu0 }
  0xfa   :  { %v1484_v43 = vpop.f32.mrf.mxu1  ;;  %909 = vadd.xlane.f32.xlu0 %v908_v41  ;;  %v842_v45 = vmul.f32 %v1948_v18, %v804_v32 }
  0xfb   :  { %v806_v46 = vmax.f32 %v774_v39, 0.0  ;;  %v773_v47 = vadd.f32 %v1942_v9, %v697_v40  ;;  %v712_v48 = vadd.f32 %v1484_v43, %v1428_v35  ;;  %v1431_v49 = vpop.f32.mrf.mxu0  ;;  %v841_v50 = vmul.f32 %v1948_v18, %v803_v38 }
  0xfc   :  { %v706_v51 = vpop.f32.mrf.mxu1  ;;  %912 = vadd.xlane.f32.xlu1 %v911_v44  ;;  %v917_v58 = vsel %vm853_vm2, %v842_v45, 0.0 }
  0xfd   :  { %v805_v52 = vmax.f32 %v773_v47, 0.0  ;;  %v776_v53 = vadd.f32 %v1942_v9, %v712_v48  ;;  %v707_v54 = vadd.f32 %v706_v51, %v384_v42  ;;  %v914_v55 = vsel %vm853_vm2, %v841_v50, 0.0  ;;  %v394_v56 = vpop.f32.mrf.mxu0 }
  0xfe   :  { %v1487_v57 = vpop.f32.mrf.mxu1  ;;  %915 = vadd.xlane.f32.xlu0 %v914_v55  ;;  %v844_v59 = vmul.f32 %v1948_v18, %v806_v46  ;;  %v2045_v46 = vld [vmem:[#allocation2] ss:$0 sm:$0xff] }
  0xff   :  { %v808_v60 = vmax.f32 %v776_v53, 0.0  ;;  %v775_v61 = vadd.f32 %v1942_v9, %v707_v54  ;;  %v722_v62 = vadd.f32 %v1487_v57, %v1431_v49  ;;  %v1434_v63 = vpop.f32.mrf.mxu0  ;;  %v843_v0 = vmul.f32 %v1948_v18, %v805_v52 }
 0x100   :  { %v716_v1 = vpop.f32.mrf.mxu1  ;;  %918 = vadd.xlane.f32.xlu1 %v917_v58  ;;  %v923_v8 = vsel %vm853_vm2, %v844_v59, 0.0 }
 0x101   :  { %v807_v2 = vmax.f32 %v775_v61, 0.0  ;;  %v778_v3 = vadd.f32 %v1942_v9, %v722_v62  ;;  %v717_v4 = vadd.f32 %v716_v1, %v394_v56  ;;  %v920_v5 = vsel %vm853_vm2, %v843_v0, 0.0  ;;  %v404_v6 = vpop.f32.mrf.mxu0 }
 0x102   :  { %v1490_v7 = vpop.f32.mrf.mxu1  ;;  %921 = vadd.xlane.f32.xlu0 %v920_v5  ;;  %v846_v10 = vmul.f32 %v1948_v18, %v808_v60 }
 0x103   :  { %v810_v11 = vmax.f32 %v778_v3, 0.0  ;;  %v777_v12 = vadd.f32 %v1942_v9, %v717_v4  ;;  %v732_v13 = vadd.f32 %v1490_v7, %v1434_v63  ;;  %v1437_v14 = vpop.f32.mrf.mxu0  ;;  %v845_v15 = vmul.f32 %v1948_v18, %v807_v2 }
 0x104   :  { %v726_v16 = vpop.f32.mrf.mxu1  ;;  %924 = vadd.xlane.f32.xlu1 %v923_v8  ;;  %v929_v24 = vsel %vm853_vm2, %v846_v10, 0.0 }
 0x105   :  { %v809_v17 = vmax.f32 %v777_v12, 0.0  ;;  %v780_v19 = vadd.f32 %v1942_v9, %v732_v13  ;;  %v727_v20 = vadd.f32 %v726_v16, %v404_v6  ;;  %v926_v21 = vsel %vm853_vm2, %v845_v15, 0.0  ;;  %v414_v23 = vpop.f32.mrf.mxu0 }
 0x106   :  { %v1493_v22 = vpop.f32.mrf.mxu1  ;;  %927 = vadd.xlane.f32.xlu0 %v926_v21  ;;  %v848_v25 = vmul.f32 %v1948_v18, %v810_v11 }
 0x107   :  { %v812_v26 = vmax.f32 %v780_v19, 0.0  ;;  %v779_v27 = vadd.f32 %v1942_v9, %v727_v20  ;;  %v742_v28 = vadd.f32 %v1493_v22, %v1437_v14  ;;  %v847_v29 = vmul.f32 %v1948_v18, %v809_v17 }
 0x108   :  { %v736_v30 = vpop.f32.mrf.mxu1  ;;  %930 = vadd.xlane.f32.xlu1 %v929_v24  ;;  %v935_v35 = vsel %vm853_vm2, %v848_v25, 0.0 }
 0x109   :  { %v811_v31 = vmax.f32 %v779_v27, 0.0  ;;  %v782_v32 = vadd.f32 %v1942_v9, %v742_v28  ;;  %v737_v33 = vadd.f32 %v736_v30, %v414_v23  ;;  %v932_v34 = vsel %vm853_vm2, %v847_v29, 0.0 }
 0x10a   :  { %933 = vadd.xlane.f32.xlu0 %v932_v34  ;;  %v850_v39 = vmul.f32 %v1948_v18, %v812_v26 }
 0x10b   :  { %v814_v36 = vmax.f32 %v782_v32, 0.0  ;;  %v781_v37 = vadd.f32 %v1942_v9, %v737_v33  ;;  %v849_v38 = vmul.f32 %v1948_v18, %v811_v31 }
 0x10c   :  { %936 = vadd.xlane.f32.xlu1 %v935_v35  ;;  %v941_v43 = vsel %vm853_vm2, %v850_v39, 0.0 }
 0x10d   :  { %v813_v40 = vmax.f32 %v781_v37, 0.0  ;;  %v938_v41 = vsel %vm853_vm2, %v849_v38, 0.0  ;;  %v852_v42 = vmul.f32 %v1948_v18, %v814_v36 }
 0x10e   :  { %939 = vadd.xlane.f32.xlu0 %v938_v41 }
 0x10f   :  { %v851_v44 = vmul.f32 %v1948_v18, %v813_v40  ;;  %v947_v45 = vsel %vm853_vm2, %v852_v42, 0.0 }
 0x110   :  { %942 = vadd.xlane.f32.xlu1 %v941_v43 }
 0x111   :  { %v944_v9 = vsel %vm853_vm2, %v851_v44, 0.0 }
 0x112   :  { %945 = vadd.xlane.f32.xlu0 %v944_v9 }
 0x114   :  { %948 = vadd.xlane.f32.xlu1 %v947_v45 }
 0x15d   :  { %v859_v47 = vpop.xlane.xlu0 %858 }
 0x15e   :  { %v957_v48 = vadd.f32 %v2045_v46, %v859_v47 }
 0x160   :  { %v1285_v49 = vmul.f32 -1.442695, %v957_v48 }
 0x161   :  { %v865_v50 = vpop.xlane.xlu1 %864  ;;  %v856_v51 = vpop.xlane.xlu0 %855 }
 0x162   :  { %1494 = vpow2.f32 %v1285_v49  ;;  %v959_v52 = vadd.f32 %v2045_v46, %v865_v50  ;;  %v956_v18 = vadd.f32 %v2045_v46, %v856_v51 }
 0x164   :  { %v1287_v53 = vmul.f32 -1.442695, %v959_v52  ;;  %v1284_v54 = vmul.f32 -1.442695, %v956_v18 }
 0x165   :  { %v862_v55 = vpop.xlane.xlu1 %861 }
 0x166   :  { %1496 = vpow2.f32 %v1287_v53  ;;  %v958_v56 = vadd.f32 %v2045_v46, %v862_v55 }
 0x167   :  { %1498 = vpow2.f32 %v1284_v54  ;;  %v868_v57 = vpop.xlane.xlu0 %867 }
 0x168   :  { %v1286_v58 = vmul.f32 -1.442695, %v958_v56  ;;  %v960_v59 = vadd.f32 %v2045_v46, %v868_v57 }
 0x169   :  { %v871_v60 = vpop.xlane.xlu1 %870 }
 0x16a   :  { %1500 = vpow2.f32 %v1286_v58  ;;  %v1288_v61 = vmul.f32 -1.442695, %v960_v59  ;;  %v961_v62 = vadd.f32 %v2045_v46, %v871_v60 }
 0x16b   :  { %v874_v63 = vpop.xlane.xlu0 %873 }
 0x16c   :  { %1502 = vpow2.f32 %v1288_v61  ;;  %v1289_v0 = vmul.f32 -1.442695, %v961_v62  ;;  %v962_v1 = vadd.f32 %v2045_v46, %v874_v63 }
 0x16d   :  { %v877_v2 = vpop.xlane.xlu1 %876 }
 0x16e   :  { %1504 = vpow2.f32 %v1289_v0  ;;  %v1290_v3 = vmul.f32 -1.442695, %v962_v1  ;;  %v963_v4 = vadd.f32 %v2045_v46, %v877_v2 }
 0x16f   :  { %v1495_v5 = vpop.eup %1494  ;;  %v880_v6 = vpop.xlane.xlu0 %879 }
 0x170   :  { %v1085_v7 = vadd.f32 1.0, %v1495_v5  ;;  %1506 = vpow2.f32 %v1290_v3  ;;  %v1291_v8 = vmul.f32 -1.442695, %v963_v4  ;;  %v964_v10 = vadd.f32 %v2045_v46, %v880_v6 }
 0x171   :  { %v883_v11 = vpop.xlane.xlu1 %882 }
 0x172   :  { %1508 = vrcp.f32 %v1085_v7  ;;  %v1292_v12 = vmul.f32 -1.442695, %v964_v10  ;;  %v965_v13 = vadd.f32 %v2045_v46, %v883_v11 }
 0x173   :  { %v1497_v14 = vpop.eup %1496  ;;  %1510 = vpow2.f32 %v1291_v8  ;;  %v886_v15 = vpop.xlane.xlu0 %885 }
 0x174   :  { %v1499_v16 = vpop.eup %1498  ;;  %v1087_v17 = vadd.f32 1.0, %v1497_v14  ;;  %1512 = vpow2.f32 %v1292_v12  ;;  %v1293_v19 = vmul.f32 -1.442695, %v965_v13  ;;  %v966_v20 = vadd.f32 %v2045_v46, %v886_v15 }
 0x175   :  { %v1084_v21 = vadd.f32 1.0, %v1499_v16  ;;  %v889_v22 = vpop.xlane.xlu1 %888 }
 0x176   :  { %1514 = vrcp.f32 %v1087_v17  ;;  %v1294_v23 = vmul.f32 -1.442695, %v966_v20  ;;  %v967_v24 = vadd.f32 %v2045_v46, %v889_v22 }
 0x177   :  { %v1501_v25 = vpop.eup %1500  ;;  %1516 = vrcp.f32 %v1084_v21  ;;  %v892_v26 = vpop.xlane.xlu0 %891 }
 0x178   :  { %v1086_v27 = vadd.f32 1.0, %v1501_v25  ;;  %1518 = vpow2.f32 %v1293_v19  ;;  %v1295_v28 = vmul.f32 -1.442695, %v967_v24  ;;  %v968_v29 = vadd.f32 %v2045_v46, %v892_v26 }
 0x179   :  { %v1503_v30 = vpop.eup %1502  ;;  %1520 = vpow2.f32 %v1294_v23  ;;  %v895_v31 = vpop.xlane.xlu1 %894 }
 0x17a   :  { %1522 = vrcp.f32 %v1086_v27  ;;  %v1088_v32 = vadd.f32 1.0, %v1503_v30  ;;  %v1296_v33 = vmul.f32 -1.442695, %v968_v29  ;;  %v969_v34 = vadd.f32 %v2045_v46, %v895_v31 }
 0x17b   :  { %v1505_v35 = vpop.eup %1504  ;;  %1524 = vpow2.f32 %v1295_v28  ;;  %v898_v36 = vpop.xlane.xlu0 %897 }
 0x17c   :  { %1526 = vrcp.f32 %v1088_v32  ;;  %v1089_v37 = vadd.f32 1.0, %v1505_v35  ;;  %v1297_v38 = vmul.f32 -1.442695, %v969_v34  ;;  %v970_v39 = vadd.f32 %v2045_v46, %v898_v36 }
 0x17d   :  { %v1507_v40 = vpop.eup %1506  ;;  %1528 = vpow2.f32 %v1296_v33  ;;  %v901_v41 = vpop.xlane.xlu1 %900 }
 0x17e   :  { %1530 = vrcp.f32 %v1089_v37  ;;  %v1090_v42 = vadd.f32 1.0, %v1507_v40  ;;  %v1298_v43 = vmul.f32 -1.442695, %v970_v39  ;;  %v971_v44 = vadd.f32 %v2045_v46, %v901_v41 }
 0x17f   :  { %v1509_v45 = vpop.eup %1508  ;;  %1532 = vpow2.f32 %v1297_v38  ;;  %v904_v9 = vpop.xlane.xlu0 %903 }
 0x180   :  { %v1511_v47 = vpop.eup %1510  ;;  %1182 = vst.msk [vmem:[%s2214_s7 + $0x8] sm:$0xff] %vm1180_vm3, %v1509_v45  ;;  %1534 = vrcp.f32 %v1090_v42  ;;  %v1299_v48 = vmul.f32 -1.442695, %v971_v44  ;;  %v972_v49 = vadd.f32 %v2045_v46, %v904_v9 }
 0x181   :  { %v1513_v50 = vpop.eup %1512  ;;  %v1091_v51 = vadd.f32 1.0, %v1511_v47  ;;  %1536 = vpow2.f32 %v1298_v43  ;;  %v907_v52 = vpop.xlane.xlu1 %906 }
 0x182   :  { %v1092_v18 = vadd.f32 1.0, %v1513_v50  ;;  %1538 = vpow2.f32 %v1299_v48  ;;  %v1300_v53 = vmul.f32 -1.442695, %v972_v49  ;;  %v973_v54 = vadd.f32 %v2045_v46, %v907_v52 }
 0x183   :  { %v1515_v55 = vpop.eup %1514  ;;  %1540 = vrcp.f32 %v1091_v51  ;;  %v910_v56 = vpop.xlane.xlu0 %909 }
 0x184   :  { %v1517_v57 = vpop.eup %1516  ;;  %1184 = vst.msk [vmem:[%s2214_s7 + $0x18] sm:$0xff] %vm1180_vm3, %v1515_v55  ;;  %1542 = vrcp.f32 %v1092_v18  ;;  %v1301_v58 = vmul.f32 -1.442695, %v973_v54  ;;  %v974_v59 = vadd.f32 %v2045_v46, %v910_v56 }
 0x185   :  { %v1519_v60 = vpop.eup %1518  ;;  %1181 = vst.msk [vmem:[%s2214_s7] sm:$0xff] %vm1180_vm3, %v1517_v57  ;;  %1544 = vpow2.f32 %v1300_v53  ;;  %v913_v61 = vpop.xlane.xlu1 %912 }
 0x186   :  { %v1521_v62 = vpop.eup %1520  ;;  %v1093_v63 = vadd.f32 1.0, %v1519_v60  ;;  %1546 = vpow2.f32 %v1301_v58  ;;  %v1302_v0 = vmul.f32 -1.442695, %v974_v59  ;;  %v975_v1 = vadd.f32 %v2045_v46, %v913_v61 }
 0x187   :  { %v1523_v2 = vpop.eup %1522  ;;  %v1094_v3 = vadd.f32 1.0, %v1521_v62  ;;  %v916_v4 = vpop.xlane.xlu0 %915 }
 0x188   :  { %v1525_v5 = vpop.eup %1524  ;;  %1183 = vst.msk [vmem:[%s2214_s7 + $0x10] sm:$0xff] %vm1180_vm3, %v1523_v2  ;;  %1548 = vrcp.f32 %v1093_v63  ;;  %v1303_v6 = vmul.f32 -1.442695, %v975_v1  ;;  %v976_v7 = vadd.f32 %v2045_v46, %v916_v4 }
 0x189   :  { %v1527_v8 = vpop.eup %1526  ;;  %1550 = vrcp.f32 %v1094_v3  ;;  %v1095_v10 = vadd.f32 1.0, %v1525_v5  ;;  %v919_v11 = vpop.xlane.xlu1 %918 }
 0x18a   :  { %v1529_v12 = vpop.eup %1528  ;;  %1185 = vst.msk [vmem:[%s2214_s7 + $0x20] sm:$0xff] %vm1180_vm3, %v1527_v8  ;;  %1552 = vpow2.f32 %v1302_v0  ;;  %v1304_v13 = vmul.f32 -1.442695, %v976_v7  ;;  %v977_v14 = vadd.f32 %v2045_v46, %v919_v11 }
 0x18b   :  { %v1531_v15 = vpop.eup %1530  ;;  %1554 = vrcp.f32 %v1095_v10  ;;  %v1096_v16 = vadd.f32 1.0, %v1529_v12  ;;  %v922_v17 = vpop.xlane.xlu0 %921 }
 0x18c   :  { %v1533_v19 = vpop.eup %1532  ;;  %1186 = vst.msk [vmem:[%s2214_s7 + $0x28] sm:$0xff] %vm1180_vm3, %v1531_v15  ;;  %1556 = vpow2.f32 %v1303_v6  ;;  %v1305_v20 = vmul.f32 -1.442695, %v977_v14  ;;  %v978_v21 = vadd.f32 %v2045_v46, %v922_v17 }
 0x18d   :  { %v1535_v22 = vpop.eup %1534  ;;  %1558 = vrcp.f32 %v1096_v16  ;;  %v1097_v23 = vadd.f32 1.0, %v1533_v19  ;;  %v925_v24 = vpop.xlane.xlu1 %924 }
 0x18e   :  { %v1537_v25 = vpop.eup %1536  ;;  %1187 = vst.msk [vmem:[%s2214_s7 + $0x30] sm:$0xff] %vm1180_vm3, %v1535_v22  ;;  %1560 = vpow2.f32 %v1304_v13  ;;  %v979_v26 = vadd.f32 %v2045_v46, %v925_v24  ;;  %v1306_v29 = vmul.f32 -1.442695, %v978_v21 }
 0x18f   :  { %v1539_v27 = vpop.eup %1538  ;;  %1562 = vrcp.f32 %v1097_v23  ;;  %v1098_v28 = vadd.f32 1.0, %v1537_v25  ;;  %v928_v30 = vpop.xlane.xlu0 %927 }
 0x190   :  { %v1541_v31 = vpop.eup %1540  ;;  %v1099_v32 = vadd.f32 1.0, %v1539_v27  ;;  %1564 = vpow2.f32 %v1305_v20  ;;  %v1307_v33 = vmul.f32 -1.442695, %v979_v26  ;;  %v980_v34 = vadd.f32 %v2045_v46, %v928_v30 }
 0x191   :  { %v1543_v35 = vpop.eup %1542  ;;  %1188 = vst.msk [vmem:[%s2214_s7 + $0x38] sm:$0xff] %vm1180_vm3, %v1541_v31  ;;  %1566 = vrcp.f32 %v1098_v28  ;;  %v931_v36 = vpop.xlane.xlu1 %930 }
 0x192   :  { %v1545_v37 = vpop.eup %1544  ;;  %1189 = vst.msk [vmem:[%s2214_s7 + $0x40] sm:$0xff] %vm1180_vm3, %v1543_v35  ;;  %1568 = vrcp.f32 %v1099_v32  ;;  %v981_v38 = vadd.f32 %v2045_v46, %v931_v36  ;;  %v1308_v41 = vmul.f32 -1.442695, %v980_v34 }
 0x193   :  { %v1547_v39 = vpop.eup %1546  ;;  %v1100_v40 = vadd.f32 1.0, %v1545_v37  ;;  %1570 = vpow2.f32 %v1306_v29  ;;  %v934_v42 = vpop.xlane.xlu0 %933 }
 0x194   :  { %v1101_v43 = vadd.f32 1.0, %v1547_v39  ;;  %1572 = vpow2.f32 %v1307_v33  ;;  %v1309_v44 = vmul.f32 -1.442695, %v981_v38  ;;  %v982_v45 = vadd.f32 %v2045_v46, %v934_v42 }
 0x195   :  { %v1549_v9 = vpop.eup %1548  ;;  %1574 = vrcp.f32 %v1100_v40  ;;  %v937_v47 = vpop.xlane.xlu1 %936 }
 0x196   :  { %v1551_v48 = vpop.eup %1550  ;;  %1190 = vst.msk [vmem:[%s2214_s7 + $0x48] sm:$0xff] %vm1180_vm3, %v1549_v9  ;;  %1576 = vrcp.f32 %v1101_v43  ;;  %v1310_v49 = vmul.f32 -1.442695, %v982_v45  ;;  %v983_v50 = vadd.f32 %v2045_v46, %v937_v47 }
 0x197   :  { %v1553_v51 = vpop.eup %1552  ;;  %1191 = vst.msk [vmem:[%s2214_s7 + $0x50] sm:$0xff] %vm1180_vm3, %v1551_v48  ;;  %1578 = vpow2.f32 %v1308_v41  ;;  %v940_v52 = vpop.xlane.xlu0 %939 }
 0x198   :  { %v1555_v18 = vpop.eup %1554  ;;  %v1102_v53 = vadd.f32 1.0, %v1553_v51  ;;  %1580 = vpow2.f32 %v1309_v44  ;;  %v1311_v54 = vmul.f32 -1.442695, %v983_v50  ;;  %v984_v55 = vadd.f32 %v2045_v46, %v940_v52 }
 0x199   :  { %v1557_v56 = vpop.eup %1556  ;;  %1192 = vst.msk [vmem:[%s2214_s7 + $0x58] sm:$0xff] %vm1180_vm3, %v1555_v18  ;;  %1582 = vpow2.f32 %v1310_v49  ;;  %v943_v57 = vpop.xlane.xlu1 %942 }
 0x19a   :  { %v1559_v58 = vpop.eup %1558  ;;  %1584 = vrcp.f32 %v1102_v53  ;;  %v1103_v59 = vadd.f32 1.0, %v1557_v56  ;;  %v1312_v60 = vmul.f32 -1.442695, %v984_v55  ;;  %v985_v61 = vadd.f32 %v2045_v46, %v943_v57 }
 0x19b   :  { %v1561_v62 = vpop.eup %1560  ;;  %1193 = vst.msk [vmem:[%s2214_s7 + $0x60] sm:$0xff] %vm1180_vm3, %v1559_v58  ;;  %1586 = vpow2.f32 %v1311_v54  ;;  %v946_v63 = vpop.xlane.xlu0 %945 }
 0x19c   :  { %v1563_v0 = vpop.eup %1562  ;;  %1588 = vrcp.f32 %v1103_v59  ;;  %v1104_v1 = vadd.f32 1.0, %v1561_v62  ;;  %v1313_v2 = vmul.f32 -1.442695, %v985_v61  ;;  %v986_v3 = vadd.f32 %v2045_v46, %v946_v63 }
 0x19d   :  { %v1565_v4 = vpop.eup %1564  ;;  %1194 = vst.msk [vmem:[%s2214_s7 + $0x68] sm:$0xff] %vm1180_vm3, %v1563_v0  ;;  %1590 = vpow2.f32 %v1312_v60  ;;  %v949_v5 = vpop.xlane.xlu1 %948 }
 0x19e   :  { %v1567_v6 = vpop.eup %1566  ;;  %1592 = vrcp.f32 %v1104_v1  ;;  %v1105_v7 = vadd.f32 1.0, %v1565_v4  ;;  %v1314_v8 = vmul.f32 -1.442695, %v986_v3  ;;  %v987_v10 = vadd.f32 %v2045_v46, %v949_v5 }
 0x19f   :  { %v1569_v11 = vpop.eup %1568  ;;  %1195 = vst.msk [vmem:[%s2214_s7 + $0x70] sm:$0xff] %vm1180_vm3, %v1567_v6  ;;  %1594 = vpow2.f32 %v1313_v2 }
 0x1a0   :  { %v1571_v12 = vpop.eup %1570  ;;  %1196 = vst.msk [vmem:[%s2214_s7 + $0x78] sm:$0xff] %vm1180_vm3, %v1569_v11  ;;  %1596 = vrcp.f32 %v1105_v7  ;;  %v1315_v13 = vmul.f32 -1.442695, %v987_v10 }
 0x1a1   :  { %v1573_v14 = vpop.eup %1572  ;;  %v1106_v15 = vadd.f32 1.0, %v1571_v12  ;;  %1598 = vpow2.f32 %v1314_v8 }
 0x1a2   :  { %v1575_v16 = vpop.eup %1574  ;;  %v1107_v46 = vadd.f32 1.0, %v1573_v14  ;;  %1600 = vpow2.f32 %v1315_v13 }
 0x1a3   :  { %v1577_v17 = vpop.eup %1576  ;;  %1197 = vst.msk [vmem:[%s2214_s7 + $0x80] sm:$0xff] %vm1180_vm3, %v1575_v16  ;;  %1602 = vrcp.f32 %v1106_v15 }
 0x1a4   :  { %v1579_v19 = vpop.eup %1578  ;;  %1198 = vst.msk [vmem:[%s2214_s7 + $0x88] sm:$0xff] %vm1180_vm3, %v1577_v17  ;;  %1604 = vrcp.f32 %v1107_v46 }
 0x1a5   :  { %v1581_v20 = vpop.eup %1580  ;;  %v1108_v21 = vadd.f32 1.0, %v1579_v19 }
 0x1a6   :  { %v1583_v22 = vpop.eup %1582  ;;  %v1109_v23 = vadd.f32 1.0, %v1581_v20 }
 0x1a7   :  { %v1585_v24 = vpop.eup %1584  ;;  %1606 = vrcp.f32 %v1108_v21  ;;  %v1110_v25 = vadd.f32 1.0, %v1583_v22 }
 0x1a8   :  { %v1587_v26 = vpop.eup %1586  ;;  %1199 = vst.msk [vmem:[%s2214_s7 + $0x90] sm:$0xff] %vm1180_vm3, %v1585_v24  ;;  %1608 = vrcp.f32 %v1109_v23 }
 0x1a9   :  { %v1589_v27 = vpop.eup %1588  ;;  %1610 = vrcp.f32 %v1110_v25  ;;  %v1111_v28 = vadd.f32 1.0, %v1587_v26 }
 0x1aa   :  { %v1591_v29 = vpop.eup %1590  ;;  %1200 = vst.msk [vmem:[%s2214_s7 + $0x98] sm:$0xff] %vm1180_vm3, %v1589_v27 }
 0x1ab   :  { %v1593_v30 = vpop.eup %1592  ;;  %1612 = vrcp.f32 %v1111_v28  ;;  %v1112_v31 = vadd.f32 1.0, %v1591_v29 }
 0x1ac   :  { %v1595_v32 = vpop.eup %1594  ;;  %1201 = vst.msk [vmem:[%s2214_s7 + $0xa0] sm:$0xff] %vm1180_vm3, %v1593_v30 }
 0x1ad   :  { %v1597_v33 = vpop.eup %1596  ;;  %1614 = vrcp.f32 %v1112_v31  ;;  %v1113_v34 = vadd.f32 1.0, %v1595_v32 }
 0x1ae   :  { %v1599_v35 = vpop.eup %1598  ;;  %1202 = vst.msk [vmem:[%s2214_s7 + $0xa8] sm:$0xff] %vm1180_vm3, %v1597_v33 }
 0x1af   :  { %v1601_v36 = vpop.eup %1600  ;;  %1616 = vrcp.f32 %v1113_v34  ;;  %v1114_v37 = vadd.f32 1.0, %v1599_v35 }
 0x1b0   :  { %v1603_v38 = vpop.eup %1602  ;;  %v1115_v39 = vadd.f32 1.0, %v1601_v36 }
 0x1b1   :  { %v1605_v40 = vpop.eup %1604  ;;  %1203 = vst.msk [vmem:[%s2214_s7 + $0xb0] sm:$0xff] %vm1180_vm3, %v1603_v38  ;;  %1618 = vrcp.f32 %v1114_v37 }
 0x1b2   :  { %1204 = vst.msk [vmem:[%s2214_s7 + $0xb8] sm:$0xff] %vm1180_vm3, %v1605_v40  ;;  %1620 = vrcp.f32 %v1115_v39 }
 0x1b4   :  { %v1607_v41 = vpop.eup %1606 }
 0x1b5   :  { %v1609_v42 = vpop.eup %1608  ;;  %1205 = vst.msk [vmem:[%s2214_s7 + $0xc0] sm:$0xff] %vm1180_vm3, %v1607_v41 }
 0x1b6   :  { %v1611_v43 = vpop.eup %1610  ;;  %1206 = vst.msk [vmem:[%s2214_s7 + $0xc8] sm:$0xff] %vm1180_vm3, %v1609_v42 }
 0x1b7   :  { %1207 = vst.msk [vmem:[%s2214_s7 + $0xd0] sm:$0xff] %vm1180_vm3, %v1611_v43 }
 0x1b8   :  { %v1613_v44 = vpop.eup %1612 }
 0x1b9   :  { %1208 = vst.msk [vmem:[%s2214_s7 + $0xd8] sm:$0xff] %vm1180_vm3, %v1613_v44 }
 0x1ba   :  { %v1615_v45 = vpop.eup %1614 }
 0x1bb   :  { %1209 = vst.msk [vmem:[%s2214_s7 + $0xe0] sm:$0xff] %vm1180_vm3, %v1615_v45 }
 0x1bc   :  { %v1617_v9 = vpop.eup %1616 }
 0x1bd   :  { %1210 = vst.msk [vmem:[%s2214_s7 + $0xe8] sm:$0xff] %vm1180_vm3, %v1617_v9 }
 0x1be   :  { %v1619_v47 = vpop.eup %1618 }
 0x1bf   :  { %v1621_v48 = vpop.eup %1620  ;;  %1211 = vst.msk [vmem:[%s2214_s7 + $0xf0] sm:$0xff] %vm1180_vm3, %v1619_v47 }
 0x1c0   :  { %1212 = vst.msk [vmem:[%s2214_s7 + $0xf8] sm:$0xff] %vm1180_vm3, %v1621_v48 }

</bundles_post_ra>
